<compile_context>
chip_gen: v7x
topology: tpu7x:2x2x1
jax: 0.10.0
libtpu: 0.0.40
codegen_flags: <defaults>
</compile_context>

<pallas_src>
import functools
import math

import numpy as np
import jax
import jax.numpy as jnp
from jax.experimental import pallas as pl
from jax.experimental.pallas import tpu as pltpu


def _row_shifts(H, shear_deg):
    """Per-row integer source-column shift for F.affine(shear=(deg,0), NEAREST).

    src_x(i, j) = j + tan(shear) * (i - H/2 + 0.5)  ->  nearest neighbour is a
    constant integer shift per row.  (Identical to per-pixel rounding except at
    exact .5 ties, which do not occur for generic shear angles.)
    """
    tan_sx = math.tan(math.radians(float(shear_deg)))
    centers = np.arange(H, dtype=np.float64) - 0.5 * H + 0.5
    return np.rint(tan_sx * centers).astype(np.int32)


def _shift_groups(shifts):
    """Group contiguous rows sharing the same shift -> tuple of (r0, r1, s)."""
    groups = []
    H = len(shifts)
    r0 = 0
    for i in range(1, H + 1):
        if i == H or shifts[i] != shifts[r0]:
            groups.append((r0, i, int(shifts[r0])))
            r0 = i
    return tuple(groups)


def _shear_kernel(x_ref, o_ref, *, groups, W):
    # x_ref / o_ref: (TB, H, W) VMEM blocks, native dtype (no f32 round-trip).
    x = x_ref[...]
    dt = x.dtype
    tb = x.shape[0]

    parts = []
    for r0, r1, s in groups:            # static Python loop over row groups
        rows = x[:, r0:r1, :]           # (TB, nr, W) static slice
        nr = r1 - r0
        if s >= W or s <= -W:
            shifted = jnp.zeros((tb, nr, W), dt)
        elif s > 0:
            pad = jnp.zeros((tb, nr, s), dt)
            shifted = jnp.concatenate([rows[:, :, s:], pad], axis=-1)
        elif s < 0:
            t = -s
            pad = jnp.zeros((tb, nr, t), dt)
            shifted = jnp.concatenate([pad, rows[:, :, : W - t]], axis=-1)
        else:
            shifted = rows
        parts.append(shifted)

    out = parts[0] if len(parts) == 1 else jnp.concatenate(parts, axis=1)
    o_ref[...] = out                    # single full-block store


def shearing(image, shear=20.0, *, vmem_budget_bytes=8 * 1024 * 1024):
    """image: (N, C, H, W). Returns sheared image, same shape/dtype."""
    N, C, H, W = image.shape
    dtype = image.dtype

    shifts = _row_shifts(H, shear)      # host-side, hoisted out of the grid loop
    groups = _shift_groups(shifts)

    NC = N * C
    x = image.reshape(NC, H, W)

    itemsize = jnp.dtype(dtype).itemsize
    # (input + output) block, double-buffered by the Pallas pipeline.
    per_plane = 2 * 2 * H * W * itemsize
    TB = max(1, min(NC, vmem_budget_bytes // max(per_plane, 1)))
    while NC % TB:                      # keep the grid exact
        TB -= 1

    kernel = functools.partial(_shear_kernel, groups=groups, W=W)
    out = pl.pallas_call(
        kernel,
        out_shape=jax.ShapeDtypeStruct((NC, H, W), dtype),
        grid=(NC // TB,),
        in_specs=[pl.BlockSpec((TB, H, W), lambda i: (i, 0, 0))],
        out_specs=pl.BlockSpec((TB, H, W), lambda i: (i, 0, 0)),
        compiler_params=pltpu.CompilerParams(
            dimension_semantics=("parallel",),
            vmem_limit_bytes=32 * 1024 * 1024,
        ),
        cost_estimate=pl.CostEstimate(
            flops=0,
            transcendentals=0,
            bytes_accessed=2 * NC * H * W * itemsize,
        ),
    )(x)
    return out.reshape(N, C, H, W)


def _reference(image, shear=20.0):
    # Pure-JAX reference of the same per-row-shift nearest-neighbour semantics.
    N, C, H, W = image.shape
    shifts = jnp.asarray(_row_shifts(H, shear))          # (H,)
    j = jnp.arange(W, dtype=jnp.int32)[None, :]
    src = j + shifts[:, None]                            # (H, W)
    valid = (src >= 0) & (src < W)
    src_c = jnp.clip(src, 0, W - 1)
    gathered = image[:, :, jnp.arange(H)[:, None], src_c]
    zero = jnp.zeros((), image.dtype)
    return jnp.where(valid[None, None], gathered, zero).astype(image.dtype)


if __name__ == "__main__":
    key = jax.random.PRNGKey(0)
    x = jax.random.normal(key, (2, 4, 16, 16), dtype=jnp.float32)

    y = shearing(x, shear=20.0)
    y = jax.block_until_ready(y)

    y_ref = _reference(x, shear=20.0)
    assert y.shape == x.shape and y.dtype == x.dtype
    assert jnp.array_equal(y, y_ref), "mismatch vs reference"

    print("KERNEL_OK")
</pallas_src>

<mosaic_0001>
module attributes {stable_mosaic.version = 11 : i64} {
  func.func @_shear_kernel(%arg0: i32, %arg1: memref<8x16x16xf32, #tpu.memory_space<vmem>>, %arg2: memref<8x16x16xf32, #tpu.memory_space<vmem>>) attributes {dimension_semantics = [#tpu.dimension_semantics<parallel>], iteration_bounds = array<i64: 1>, scalar_prefetch = 0 : i64, scratch_operands = 0 : i64, tpu.core_type = #tpu.core_type<tc>, window_params = [{transform_indices = @transform_0, window_bounds = array<i64: 8, 16, 16>}, {transform_indices = @transform_1, window_bounds = array<i64: 8, 16, 16>}]} {
    %c0 = arith.constant 0 : index
    %c0_0 = arith.constant 0 : index
    %c0_1 = arith.constant 0 : index
    %0 = vector.load %arg1[%c0, %c0_0, %c0_1] : memref<8x16x16xf32, #tpu.memory_space<vmem>>, vector<8x16x16xf32>
    %1 = vector.extract_strided_slice %0 {offsets = [0, 0, 0], sizes = [8, 1, 16], strides = [1, 1, 1]} : vector<8x16x16xf32> to vector<8x1x16xf32>
    %cst = arith.constant 0.000000e+00 : f32
    %2 = vector.broadcast %cst : f32 to vector<8x1x3xf32>
    %3 = vector.extract_strided_slice %1 {offsets = [0, 0, 0], sizes = [8, 1, 13], strides = [1, 1, 1]} : vector<8x1x16xf32> to vector<8x1x13xf32>
    %4 = tpu.concatenate %2, %3 in 2 : vector<8x1x3xf32>, vector<8x1x13xf32> -> vector<8x1x16xf32>
    %5 = vector.extract_strided_slice %0 {offsets = [0, 1, 0], sizes = [8, 3, 16], strides = [1, 1, 1]} : vector<8x16x16xf32> to vector<8x3x16xf32>
    %cst_2 = arith.constant 0.000000e+00 : f32
    %6 = vector.broadcast %cst_2 : f32 to vector<8x3x2xf32>
    %7 = vector.extract_strided_slice %5 {offsets = [0, 0, 0], sizes = [8, 3, 14], strides = [1, 1, 1]} : vector<8x3x16xf32> to vector<8x3x14xf32>
    %8 = tpu.concatenate %6, %7 in 2 : vector<8x3x2xf32>, vector<8x3x14xf32> -> vector<8x3x16xf32>
    %9 = vector.extract_strided_slice %0 {offsets = [0, 4, 0], sizes = [8, 3, 16], strides = [1, 1, 1]} : vector<8x16x16xf32> to vector<8x3x16xf32>
    %cst_3 = arith.constant 0.000000e+00 : f32
    %10 = vector.broadcast %cst_3 : f32 to vector<8x3x1xf32>
    %11 = vector.extract_strided_slice %9 {offsets = [0, 0, 0], sizes = [8, 3, 15], strides = [1, 1, 1]} : vector<8x3x16xf32> to vector<8x3x15xf32>
    %12 = tpu.concatenate %10, %11 in 2 : vector<8x3x1xf32>, vector<8x3x15xf32> -> vector<8x3x16xf32>
    %13 = vector.extract_strided_slice %0 {offsets = [0, 7, 0], sizes = [8, 2, 16], strides = [1, 1, 1]} : vector<8x16x16xf32> to vector<8x2x16xf32>
    %14 = vector.extract_strided_slice %0 {offsets = [0, 9, 0], sizes = [8, 3, 16], strides = [1, 1, 1]} : vector<8x16x16xf32> to vector<8x3x16xf32>
    %cst_4 = arith.constant 0.000000e+00 : f32
    %15 = vector.broadcast %cst_4 : f32 to vector<8x3x1xf32>
    %16 = vector.extract_strided_slice %14 {offsets = [0, 0, 1], sizes = [8, 3, 15], strides = [1, 1, 1]} : vector<8x3x16xf32> to vector<8x3x15xf32>
    %17 = tpu.concatenate %16, %15 in 2 : vector<8x3x15xf32>, vector<8x3x1xf32> -> vector<8x3x16xf32>
    %18 = vector.extract_strided_slice %0 {offsets = [0, 12, 0], sizes = [8, 3, 16], strides = [1, 1, 1]} : vector<8x16x16xf32> to vector<8x3x16xf32>
    %cst_5 = arith.constant 0.000000e+00 : f32
    %19 = vector.broadcast %cst_5 : f32 to vector<8x3x2xf32>
    %20 = vector.extract_strided_slice %18 {offsets = [0, 0, 2], sizes = [8, 3, 14], strides = [1, 1, 1]} : vector<8x3x16xf32> to vector<8x3x14xf32>
    %21 = tpu.concatenate %20, %19 in 2 : vector<8x3x14xf32>, vector<8x3x2xf32> -> vector<8x3x16xf32>
    %22 = vector.extract_strided_slice %0 {offsets = [0, 15, 0], sizes = [8, 1, 16], strides = [1, 1, 1]} : vector<8x16x16xf32> to vector<8x1x16xf32>
    %cst_6 = arith.constant 0.000000e+00 : f32
    %23 = vector.broadcast %cst_6 : f32 to vector<8x1x3xf32>
    %24 = vector.extract_strided_slice %22 {offsets = [0, 0, 3], sizes = [8, 1, 13], strides = [1, 1, 1]} : vector<8x1x16xf32> to vector<8x1x13xf32>
    %25 = tpu.concatenate %24, %23 in 2 : vector<8x1x13xf32>, vector<8x1x3xf32> -> vector<8x1x16xf32>
    %26 = tpu.concatenate %4, %8, %12, %13, %17, %21, %25 in 1 : vector<8x1x16xf32>, vector<8x3x16xf32>, vector<8x3x16xf32>, vector<8x2x16xf32>, vector<8x3x16xf32>, vector<8x3x16xf32>, vector<8x1x16xf32> -> vector<8x16x16xf32>
    %c0_7 = arith.constant 0 : index
    %c0_8 = arith.constant 0 : index
    %c0_9 = arith.constant 0 : index
    %27 = vector.load %arg2[%c0_7, %c0_8, %c0_9] : memref<8x16x16xf32, #tpu.memory_space<vmem>>, vector<8x16x16xf32>
    tpu.vector_store %arg2[%c0_7, %c0_8, %c0_9], %26 {strides = array<i32>} : memref<8x16x16xf32, #tpu.memory_space<vmem>>, vector<8x16x16xf32>,
    return
  }
  func.func @transform_0(%arg0: i32) -> (i32, i32, i32) {
    %c0_i32 = arith.constant 0 : i32
    %c0_i32_0 = arith.constant 0 : i32
    %c0_i32_1 = arith.constant 0 : i32
    return %arg0, %c0_i32, %c0_i32_0 : i32, i32, i32
  }
  func.func @transform_1(%arg0: i32) -> (i32, i32, i32) {
    %c0_i32 = arith.constant 0 : i32
    %c0_i32_0 = arith.constant 0 : i32
    %c0_i32_1 = arith.constant 0 : i32
    return %arg0, %c0_i32, %c0_i32_0 : i32, i32, i32
  }
}

</mosaic_0001>

<bundles_post_ra>
// kernel: tpu_custom_call.1
= control target key start
LH: loop header
LB: loop body
LE: loop exit
PB: predicated region body
PF: predicated region fallthrough
CT: control target
= control target key end

     0   :  { %6 = vsyncpa [#allocation3], 0  ;;  %s730_s0 = inlined_call_operand.hbm [shape: f32[8,16,16], index: 0, kind: input, shape index: {}]   ;;  %s731_s1 = inlined_call_operand.hbm [shape: f32[8,16,16], index: 1, kind: output, shape index: {}]  }
   0x1   :  { %7 = vsyncpa [#allocation4], 0  ;;  %s460_s6 = smov [#allocation2]   ;;  %s412_s10 = scalar_lea.hbm %s730_s0, 2048 }
   0x2   :  { %s13_s7 = sshll.u32 %s460_s6, 4  ;;  %p413_p0 = scmp.ne.s32.totalorder %s730_s0, %s412_s10  ;;  %s14_s7 = int_to_ptr.vmem [resolvable:$true] %s13_s7 }
   0x3   :  { %p416_p1 = scmp.lt.u32.totalorder %s412_s10, %s730_s0 }
   0x5   :  { %p418_p2 = pnand %p416_p1, %p413_p0 }
   0x7   :  { %421 = shalt.err (!%p418_p2)
}
   0x8   :  { %s422_s15 = scalar_lea.vmem %s14_s7, 2048  ;;  %p427_p4 = scmp.lt.s32.totalorder %s14_s7, %s14_s7 }
   0x9   :  { %p423_p3 = scmp.ne.s32.totalorder %s14_s7, %s422_s15  ;;  %p428_p5 = scmp.lt.s32.totalorder %s422_s15, %s422_s15 }
   0xb   :  { %p429_p6 = por %p428_p5, %p427_p4 }
   0xd   :  { %p430_p7 = pnand %p429_p6, %p423_p3 }
   0xf   :  { %433 = shalt.err (!%p430_p7)
}
  0x10   :  { %s461_s16 = smov 128   ;;  %s462_s17 = smov 8  }
  0x11   :  { %19 = dma.hbm_to_vmem [thread:$0]  %s730_s0, 2048, %s14_s7, [#allocation3], %s461_s16, %s461_s16, %s462_s17  }
  0x12   :  { %456 = dma.done.wait [#allocation3], 2048  }
  0x13   :  { %457 = vsyncadd [#allocation3], 4294965248  ;;  %v495_v0 = vld [vmem:[#allocation2 + $0x20] sm:$0xff]  ;;  %s463_s20 = smov 3   ;;  %v501_v2 = vld [vmem:[#allocation2 + $0x30] sm:$0xff]  ;;  %s464_s0 = smov 2  }
  0x14   :  { %v497_v1 = vld [vmem:[#allocation2] sm:$0xff]  ;;  %51 = vrot.lane.b32.xlu1 %v495_v0, %s463_s20  ;;  %v503_v3 = vld [vmem:[#allocation2 + $0x10] sm:$0xff]  ;;  %v83_v10 = vrot.slane %v501_v2, 1  ;;  %v82_v11 = vrot.slane %v495_v0, 1  ;;  %s465_s21 = smov 1   ;;  %v124_v18 = vrot.slane %v501_v2, 4 }
  0x15   :  { %47 = vrot.lane.b32.xlu0 %v497_v1, %s463_s20  ;;  %v507_v4 = vld [vmem:[#allocation2 + $0x50] sm:$0xff]  ;;  %v509_v5 = vld [vmem:[#allocation2 + $0x40] sm:$0xff]  ;;  %v81_v8 = vrot.slane %v503_v3, 1  ;;  %v80_v9 = vrot.slane %v497_v1, 1  ;;  %v122_v16 = vrot.slane %v503_v3, 4  ;;  %v121_v17 = vrot.slane %v497_v1, 4 }
  0x16   :  { %v513_v6 = vld [vmem:[#allocation2 + $0x70] sm:$0xff]  ;;  %v515_v7 = vld [vmem:[#allocation2 + $0x60] sm:$0xff]  ;;  %v85_v12 = vrot.slane %v507_v4, 1  ;;  %v84_v13 = vrot.slane %v509_v5, 1  ;;  %v123_v19 = vrot.slane %v495_v0, 4  ;;  %v126_v20 = vrot.slane %v507_v4, 4 }
  0x17   :  { %v87_v14 = vrot.slane %v513_v6, 1  ;;  %v86_v15 = vrot.slane %v515_v7, 1  ;;  %v125_v21 = vrot.slane %v509_v5, 4  ;;  %v128_v22 = vrot.slane %v513_v6, 4  ;;  %v535_v24 = vld [vmem:[#allocation2 + $0x18] sm:$0xff]  ;;  %v537_v25 = vld [vmem:[#allocation2 + $0x8] sm:$0xff] }
  0x18   :  { %53 = vrot.lane.b32.xlu1 %v501_v2, %s463_s20  ;;  %v127_v23 = vrot.slane %v515_v7, 4  ;;  %s466_s22 = smov 127   ;;  %v541_v26 = vld [vmem:[#allocation2 + $0x38] sm:$0xff]  ;;  %v543_v27 = vld [vmem:[#allocation2 + $0x28] sm:$0xff]  ;;  %s467_s23 = smov 126   ;;  %vm112_vm0 = vcmask 15360  }
  0x19   :  { %49 = vrot.lane.b32.xlu0 %v503_v3, %s463_s20  ;;  %v547_v28 = vld [vmem:[#allocation2 + $0x58] sm:$0xff]  ;;  %v549_v29 = vld [vmem:[#allocation2 + $0x48] sm:$0xff]  ;;  %s468_s24 = smov 125   ;;  %vm153_vm1 = vcmask 7168   ;;  %vm71_vm2 = vcmask 23552   ;;  %vm317_vm3 = vcmask 1040384  }
  0x1a   :  { %v553_v30 = vld [vmem:[#allocation2 + $0x78] sm:$0xff]  ;;  %v555_v31 = vld [vmem:[#allocation2 + $0x68] sm:$0xff]  ;;  %vm326_vm4 = vcmask 1043456   ;;  %vm335_vm5 = vcmask 1046528   ;;  %vm368_vm6 = vcmask 130048   ;;  %vm194_vm7 = vcmask 121856  }
  0x1b   :  { %vm227_vm8 = vcmask 113664   ;;  %vm260_vm9 = vcmask 105472   ;;  %s469_s25 = smov [#allocation5]  }
  0x1c   :  { %57 = vrot.lane.b32.xlu1 %v507_v4, %s463_s20  ;;  %s390_s26 = sshll.u32 %s469_s25, 4  ;;  %s391_s26 = int_to_ptr.vmem [resolvable:$true] %s390_s26 }
  0x1d   :  { %55 = vrot.lane.b32.xlu0 %v509_v5, %s463_s20  ;;  %s434_s27 = scalar_lea.vmem %s391_s26, 2048  ;;  %p439_p9 = scmp.lt.s32.totalorder %s391_s26, %s391_s26 }
  0x1e   :  { %p435_p8 = scmp.ne.s32.totalorder %s391_s26, %s434_s27  ;;  %p440_p10 = scmp.lt.s32.totalorder %s434_s27, %s434_s27 }
  0x20   :  { %61 = vrot.lane.b32.xlu1 %v513_v6, %s463_s20  ;;  %p441_p11 = por %p440_p10, %p439_p9 }
  0x21   :  { %59 = vrot.lane.b32.xlu0 %v515_v7, %s463_s20 }
  0x22   :  { %p442_p12 = pnand %p441_p11, %p435_p8 }
  0x24   :  { %90 = vrot.lane.b32.xlu1 %v81_v8, %s464_s0 }
  0x25   :  { %88 = vrot.lane.b32.xlu0 %v80_v9, %s464_s0 }
  0x28   :  { %94 = vrot.lane.b32.xlu1 %v83_v10, %s464_s0 }
  0x29   :  { %92 = vrot.lane.b32.xlu0 %v82_v11, %s464_s0 }
  0x2c   :  { %98 = vrot.lane.b32.xlu1 %v85_v12, %s464_s0 }
  0x2d   :  { %96 = vrot.lane.b32.xlu0 %v84_v13, %s464_s0 }
  0x30   :  { %102 = vrot.lane.b32.xlu1 %v87_v14, %s464_s0 }
  0x31   :  { %100 = vrot.lane.b32.xlu0 %v86_v15, %s464_s0 }
  0x34   :  { %131 = vrot.lane.b32.xlu1 %v122_v16, %s465_s21 }
  0x35   :  { %129 = vrot.lane.b32.xlu0 %v121_v17, %s465_s21 }
  0x38   :  { %135 = vrot.lane.b32.xlu1 %v124_v18, %s465_s21 }
  0x39   :  { %133 = vrot.lane.b32.xlu0 %v123_v19, %s465_s21 }
  0x3c   :  { %139 = vrot.lane.b32.xlu1 %v126_v20, %s465_s21 }
  0x3d   :  { %137 = vrot.lane.b32.xlu0 %v125_v21, %s465_s21 }
  0x40   :  { %143 = vrot.lane.b32.xlu1 %v128_v22, %s465_s21 }
  0x41   :  { %141 = vrot.lane.b32.xlu0 %v127_v23, %s465_s21 }
  0x44   :  { %172 = vrot.lane.b32.xlu1 %v535_v24, %s466_s22 }
  0x45   :  { %170 = vrot.lane.b32.xlu0 %v537_v25, %s466_s22 }
  0x48   :  { %176 = vrot.lane.b32.xlu1 %v541_v26, %s466_s22 }
  0x49   :  { %174 = vrot.lane.b32.xlu0 %v543_v27, %s466_s22 }
  0x4c   :  { %180 = vrot.lane.b32.xlu1 %v547_v28, %s466_s22 }
  0x4d   :  { %178 = vrot.lane.b32.xlu0 %v549_v29, %s466_s22 }
  0x50   :  { %184 = vrot.lane.b32.xlu1 %v553_v30, %s466_s22 }
  0x51   :  { %182 = vrot.lane.b32.xlu0 %v555_v31, %s466_s22 }
  0x54   :  { %205 = vrot.lane.b32.xlu1 %v535_v24, %s467_s23 }
  0x55   :  { %203 = vrot.lane.b32.xlu0 %v537_v25, %s467_s23 }
  0x58   :  { %209 = vrot.lane.b32.xlu1 %v541_v26, %s467_s23 }
  0x59   :  { %207 = vrot.lane.b32.xlu0 %v543_v27, %s467_s23 }
  0x5c   :  { %213 = vrot.lane.b32.xlu1 %v547_v28, %s467_s23 }
  0x5d   :  { %211 = vrot.lane.b32.xlu0 %v549_v29, %s467_s23 }
  0x60   :  { %217 = vrot.lane.b32.xlu1 %v553_v30, %s467_s23 }
  0x61   :  { %215 = vrot.lane.b32.xlu0 %v555_v31, %s467_s23 }
  0x64   :  { %238 = vrot.lane.b32.xlu1 %v535_v24, %s468_s24 }
  0x65   :  { %236 = vrot.lane.b32.xlu0 %v537_v25, %s468_s24 }
  0x68   :  { %242 = vrot.lane.b32.xlu1 %v541_v26, %s468_s24 }
  0x69   :  { %240 = vrot.lane.b32.xlu0 %v543_v27, %s468_s24 }
  0x6c   :  { %246 = vrot.lane.b32.xlu1 %v547_v28, %s468_s24 }
  0x6d   :  { %244 = vrot.lane.b32.xlu0 %v549_v29, %s468_s24 }
  0x70   :  { %250 = vrot.lane.b32.xlu1 %v553_v30, %s468_s24 }
  0x71   :  { %248 = vrot.lane.b32.xlu0 %v555_v31, %s468_s24 }
  0x86   :  { %v52_v32 = vpop.permute.xlu1 %51 }
  0x87   :  { %v48_v33 = vpop.permute.xlu0 %47  ;;  %v74_v20 = vsel %vm71_vm2, 0.0, %v52_v32 }
  0x88   :  { %v72_v58 = vsel %vm71_vm2, 0.0, %v48_v33 }
  0x8a   :  { %v54_v34 = vpop.permute.xlu1 %53 }
  0x8b   :  { %v50_v35 = vpop.permute.xlu0 %49  ;;  %v75_v21 = vsel %vm71_vm2, 0.0, %v54_v34 }
  0x8c   :  { %v73_v59 = vsel %vm71_vm2, 0.0, %v50_v35 }
  0x8e   :  { %v575_v36 = vpop.permute.xlu1 %57 }
  0x8f   :  { %v577_v37 = vpop.permute.xlu0 %55 }
  0x92   :  { %v579_v38 = vpop.permute.xlu1 %61 }
  0x93   :  { %v581_v39 = vpop.permute.xlu0 %59 }
  0x96   :  { %v91_v40 = vpop.permute.xlu1 %90 }
  0x97   :  { %v89_v41 = vpop.permute.xlu0 %88  ;;  %v114_v46 = vsel %vm112_vm0, 0.0, %v91_v40 }
  0x98   :  { %v113_v47 = vsel %vm112_vm0, 0.0, %v89_v41  ;;  %v278_v50 = vrot.slane %v114_v46, 7 }
  0x99   :  { %v277_v51 = vrot.slane %v113_v47, 7 }
  0x9a   :  { %v95_v42 = vpop.permute.xlu1 %94  ;;  %v319_v62 = vsel %vm317_vm3, %v73_v59, %v278_v50 }
  0x9b   :  { %v93_v43 = vpop.permute.xlu0 %92  ;;  %v116_v52 = vsel %vm112_vm0, 0.0, %v95_v42  ;;  %v318_v63 = vsel %vm317_vm3, %v72_v58, %v277_v51 }
  0x9c   :  { %v115_v53 = vsel %vm112_vm0, 0.0, %v93_v43  ;;  %v280_v8 = vrot.slane %v116_v52, 7 }
  0x9d   :  { %v279_v9 = vrot.slane %v115_v53, 7 }
  0x9e   :  { %v99_v44 = vpop.permute.xlu1 %98  ;;  %v321_v33 = vsel %vm317_vm3, %v75_v21, %v280_v8 }
  0x9f   :  { %v97_v45 = vpop.permute.xlu0 %96  ;;  %v118_v10 = vsel %vm112_vm0, 0.0, %v99_v44 }
  0xa0   :  { %v117_v11 = vsel %vm112_vm0, 0.0, %v97_v45  ;;  %v282_v35 = vrot.slane %v118_v10, 7 }
  0xa2   :  { %v103_v48 = vpop.permute.xlu1 %102 }
  0xa3   :  { %v101_v49 = vpop.permute.xlu0 %100  ;;  %v120_v40 = vsel %vm112_vm0, 0.0, %v103_v48  ;;  %v77_v48 = vsel %vm71_vm2, 0.0, %v575_v36 }
  0xa4   :  { %v119_v41 = vsel %vm112_vm0, 0.0, %v101_v49  ;;  %v76_v49 = vsel %vm71_vm2, 0.0, %v577_v37  ;;  %v284_v52 = vrot.slane %v120_v40, 7 }
  0xa5   :  { %v283_v53 = vrot.slane %v119_v41, 7 }
  0xa6   :  { %v132_v54 = vpop.permute.xlu1 %131 }
  0xa7   :  { %v130_v55 = vpop.permute.xlu0 %129  ;;  %v155_v56 = vsel %vm153_vm1, 0.0, %v132_v54 }
  0xa8   :  { %v154_v57 = vsel %vm153_vm1, 0.0, %v130_v55  ;;  %v302_v60 = vrot.slane %v155_v56, 4 }
  0xa9   :  { %v301_v61 = vrot.slane %v154_v57, 4 }
  0xaa   :  { %v328_v12 = vsel %vm326_vm4, %v319_v62, %v302_v60  ;;  %v136_v14 = vpop.permute.xlu1 %135  ;;  %v79_v60 = vsel %vm71_vm2, 0.0, %v579_v38 }
  0xab   :  { %v327_v13 = vsel %vm326_vm4, %v318_v63, %v301_v61  ;;  %v134_v15 = vpop.permute.xlu0 %133  ;;  %v337_v16 = vsel %vm335_vm5, %v328_v12, %v503_v3  ;;  %v157_v18 = vsel %vm153_vm1, 0.0, %v136_v14  ;;  %v320_v3 = vsel %vm317_vm3, %v74_v20, %v279_v9 }
  0xac   :  { %v336_v17 = vsel %vm335_vm5, %v327_v13, %v497_v1  ;;  %v156_v19 = vsel %vm153_vm1, 0.0, %v134_v15  ;;  %371 = vst.msk [vmem:[#allocation5 + $0x10] sm:$0xff] %vm368_vm6, %v337_v16  ;;  %v304_v22 = vrot.slane %v157_v18, 4  ;;  %v281_v1 = vrot.slane %v117_v11, 7 }
  0xad   :  { %369 = vst.msk [vmem:[#allocation5] sm:$0xff] %vm368_vm6, %v336_v17  ;;  %v303_v23 = vrot.slane %v156_v19, 4  ;;  %v78_v61 = vsel %vm71_vm2, 0.0, %v581_v39 }
  0xae   :  { %v330_v32 = vsel %vm326_vm4, %v321_v33, %v304_v22  ;;  %v140_v42 = vpop.permute.xlu1 %139 }
  0xaf   :  { %v329_v34 = vsel %vm326_vm4, %v320_v3, %v303_v23  ;;  %v138_v43 = vpop.permute.xlu0 %137  ;;  %v339_v44 = vsel %vm335_vm5, %v330_v32, %v501_v2  ;;  %v159_v46 = vsel %vm153_vm1, 0.0, %v140_v42  ;;  %v323_v2 = vsel %vm317_vm3, %v77_v48, %v282_v35 }
  0xb0   :  { %v338_v45 = vsel %vm335_vm5, %v329_v34, %v495_v0  ;;  %v158_v47 = vsel %vm153_vm1, 0.0, %v138_v43  ;;  %375 = vst.msk [vmem:[#allocation5 + $0x30] sm:$0xff] %vm368_vm6, %v339_v44  ;;  %v306_v50 = vrot.slane %v159_v46, 4  ;;  %v322_v0 = vsel %vm317_vm3, %v76_v49, %v281_v1 }
  0xb1   :  { %373 = vst.msk [vmem:[#allocation5 + $0x20] sm:$0xff] %vm368_vm6, %v338_v45  ;;  %v305_v51 = vrot.slane %v158_v47, 4 }
  0xb2   :  { %v332_v54 = vsel %vm326_vm4, %v323_v2, %v306_v50  ;;  %v144_v36 = vpop.permute.xlu1 %143 }
  0xb3   :  { %v331_v55 = vsel %vm326_vm4, %v322_v0, %v305_v51  ;;  %v142_v56 = vpop.permute.xlu0 %141  ;;  %v341_v37 = vsel %vm335_vm5, %v332_v54, %v507_v4  ;;  %v161_v58 = vsel %vm153_vm1, 0.0, %v144_v36  ;;  %v325_v4 = vsel %vm317_vm3, %v79_v60, %v284_v52 }
  0xb4   :  { %v340_v57 = vsel %vm335_vm5, %v331_v55, %v509_v5  ;;  %v160_v59 = vsel %vm153_vm1, 0.0, %v142_v56  ;;  %379 = vst.msk [vmem:[#allocation5 + $0x50] sm:$0xff] %vm368_vm6, %v341_v37  ;;  %v308_v62 = vrot.slane %v161_v58, 4  ;;  %v324_v5 = vsel %vm317_vm3, %v78_v61, %v283_v53 }
  0xb5   :  { %377 = vst.msk [vmem:[#allocation5 + $0x40] sm:$0xff] %vm368_vm6, %v340_v57  ;;  %v307_v63 = vrot.slane %v160_v59, 4 }
  0xb6   :  { %v334_v8 = vsel %vm326_vm4, %v325_v4, %v308_v62  ;;  %v173_v10 = vpop.permute.xlu1 %172 }
  0xb7   :  { %v333_v9 = vsel %vm326_vm4, %v324_v5, %v307_v63  ;;  %v171_v11 = vpop.permute.xlu0 %170  ;;  %v343_v38 = vsel %vm335_vm5, %v334_v8, %v513_v6  ;;  %v196_v33 = vsel %vm194_vm7, %v173_v10, 0.0 }
  0xb8   :  { %v342_v39 = vsel %vm335_vm5, %v333_v9, %v515_v7  ;;  %383 = vst.msk [vmem:[#allocation5 + $0x70] sm:$0xff] %vm368_vm6, %v343_v38  ;;  %v195_v3 = vsel %vm194_vm7, %v171_v11, 0.0  ;;  %v345_v40 = vsel %vm317_vm3, %v535_v24, %v196_v33 }
  0xb9   :  { %381 = vst.msk [vmem:[#allocation5 + $0x60] sm:$0xff] %vm368_vm6, %v342_v39  ;;  %v344_v41 = vsel %vm317_vm3, %v537_v25, %v195_v3 }
  0xba   :  { %v177_v12 = vpop.permute.xlu1 %176 }
  0xbb   :  { %v175_v13 = vpop.permute.xlu0 %174  ;;  %v198_v32 = vsel %vm194_vm7, %v177_v12, 0.0 }
  0xbc   :  { %v197_v34 = vsel %vm194_vm7, %v175_v13, 0.0  ;;  %v347_v50 = vsel %vm317_vm3, %v541_v26, %v198_v32 }
  0xbd   :  { %v346_v51 = vsel %vm317_vm3, %v543_v27, %v197_v34 }
  0xbe   :  { %v181_v14 = vpop.permute.xlu1 %180 }
  0xbf   :  { %v179_v15 = vpop.permute.xlu0 %178  ;;  %v200_v2 = vsel %vm194_vm7, %v181_v14, 0.0 }
  0xc0   :  { %v199_v0 = vsel %vm194_vm7, %v179_v15, 0.0  ;;  %v349_v58 = vsel %vm317_vm3, %v547_v28, %v200_v2 }
  0xc1   :  { %v348_v59 = vsel %vm317_vm3, %v549_v29, %v199_v0 }
  0xc2   :  { %v185_v16 = vpop.permute.xlu1 %184 }
  0xc3   :  { %v183_v17 = vpop.permute.xlu0 %182  ;;  %v202_v60 = vsel %vm194_vm7, %v185_v16, 0.0 }
  0xc4   :  { %v201_v61 = vsel %vm194_vm7, %v183_v17, 0.0  ;;  %v351_v38 = vsel %vm317_vm3, %v553_v30, %v202_v60 }
  0xc5   :  { %v350_v39 = vsel %vm317_vm3, %v555_v31, %v201_v61 }
  0xc6   :  { %v206_v18 = vpop.permute.xlu1 %205 }
  0xc7   :  { %v204_v19 = vpop.permute.xlu0 %203  ;;  %v229_v35 = vsel %vm227_vm8, %v206_v18, 0.0 }
  0xc8   :  { %v228_v1 = vsel %vm227_vm8, %v204_v19, 0.0  ;;  %v353_v44 = vsel %vm326_vm4, %v345_v40, %v229_v35 }
  0xc9   :  { %v352_v45 = vsel %vm326_vm4, %v344_v41, %v228_v1 }
  0xca   :  { %v210_v20 = vpop.permute.xlu1 %209 }
  0xcb   :  { %v208_v21 = vpop.permute.xlu0 %207  ;;  %v231_v48 = vsel %vm227_vm8, %v210_v20, 0.0 }
  0xcc   :  { %v230_v24 = vsel %vm227_vm8, %v208_v21, 0.0  ;;  %v355_v54 = vsel %vm326_vm4, %v347_v50, %v231_v48 }
  0xcd   :  { %v354_v55 = vsel %vm326_vm4, %v346_v51, %v230_v24 }
  0xce   :  { %v214_v22 = vpop.permute.xlu1 %213 }
  0xcf   :  { %v212_v23 = vpop.permute.xlu0 %211  ;;  %v233_v37 = vsel %vm227_vm8, %v214_v22, 0.0 }
  0xd0   :  { %v232_v26 = vsel %vm227_vm8, %v212_v23, 0.0  ;;  %v357_v4 = vsel %vm326_vm4, %v349_v58, %v233_v37 }
  0xd1   :  { %v356_v5 = vsel %vm326_vm4, %v348_v59, %v232_v26 }
  0xd2   :  { %v218_v6 = vpop.permute.xlu1 %217 }
  0xd3   :  { %v216_v7 = vpop.permute.xlu0 %215  ;;  %v235_v10 = vsel %vm227_vm8, %v218_v6, 0.0 }
  0xd4   :  { %v234_v28 = vsel %vm227_vm8, %v216_v7, 0.0  ;;  %v359_v14 = vsel %vm326_vm4, %v351_v38, %v235_v10 }
  0xd5   :  { %v358_v15 = vsel %vm326_vm4, %v350_v39, %v234_v28 }
  0xd6   :  { %v239_v42 = vpop.permute.xlu1 %238 }
  0xd7   :  { %v237_v43 = vpop.permute.xlu0 %236  ;;  %v262_v46 = vsel %vm260_vm9, %v239_v42, 0.0 }
  0xd8   :  { %v261_v47 = vsel %vm260_vm9, %v237_v43, 0.0  ;;  %v361_v25 = vsel %vm335_vm5, %v353_v44, %v262_v46 }
  0xd9   :  { %v360_v49 = vsel %vm335_vm5, %v352_v45, %v261_v47  ;;  %372 = vst.msk [vmem:[#allocation5 + $0x18] sm:$0xff] %vm368_vm6, %v361_v25 }
  0xda   :  { %370 = vst.msk [vmem:[#allocation5 + $0x8] sm:$0xff] %vm368_vm6, %v360_v49  ;;  %v243_v52 = vpop.permute.xlu1 %242 }
  0xdb   :  { %v241_v53 = vpop.permute.xlu0 %240  ;;  %v264_v36 = vsel %vm260_vm9, %v243_v52, 0.0 }
  0xdc   :  { %v263_v56 = vsel %vm260_vm9, %v241_v53, 0.0  ;;  %v363_v27 = vsel %vm335_vm5, %v355_v54, %v264_v36 }
  0xdd   :  { %v362_v57 = vsel %vm335_vm5, %v354_v55, %v263_v56  ;;  %376 = vst.msk [vmem:[#allocation5 + $0x38] sm:$0xff] %vm368_vm6, %v363_v27 }
  0xde   :  { %374 = vst.msk [vmem:[#allocation5 + $0x28] sm:$0xff] %vm368_vm6, %v362_v57  ;;  %v247_v62 = vpop.permute.xlu1 %246 }
  0xdf   :  { %v245_v63 = vpop.permute.xlu0 %244  ;;  %v266_v8 = vsel %vm260_vm9, %v247_v62, 0.0 }
  0xe0   :  { %v265_v9 = vsel %vm260_vm9, %v245_v63, 0.0  ;;  %v365_v29 = vsel %vm335_vm5, %v357_v4, %v266_v8 }
  0xe1   :  { %v364_v11 = vsel %vm335_vm5, %v356_v5, %v265_v9  ;;  %380 = vst.msk [vmem:[#allocation5 + $0x58] sm:$0xff] %vm368_vm6, %v365_v29 }
  0xe2   :  { %378 = vst.msk [vmem:[#allocation5 + $0x48] sm:$0xff] %vm368_vm6, %v364_v11  ;;  %v251_v12 = vpop.permute.xlu1 %250 }
  0xe3   :  { %v249_v13 = vpop.permute.xlu0 %248  ;;  %v268_v16 = vsel %vm260_vm9, %v251_v12, 0.0 }
  0xe4   :  { %v267_v17 = vsel %vm260_vm9, %v249_v13, 0.0  ;;  %v367_v18 = vsel %vm335_vm5, %v359_v14, %v268_v16 }
  0xe5   :  { %v366_v19 = vsel %vm335_vm5, %v358_v15, %v267_v17  ;;  %384 = vst.msk [vmem:[#allocation5 + $0x78] sm:$0xff] %vm368_vm6, %v367_v18 }
  0xe6   :  { %382 = vst.msk [vmem:[#allocation5 + $0x68] sm:$0xff] %vm368_vm6, %v366_v19 }
  0xe7   :  { %445 = shalt.err (!%p442_p12)
}
  0xe8   :  { %s446_s30 = scalar_lea.hbm %s731_s1, 2048 }
  0xe9   :  { %p447_p13 = scmp.ne.s32.totalorder %s731_s1, %s446_s30  ;;  %p450_p0 = scmp.lt.u32.totalorder %s446_s30, %s731_s1 }
  0xeb   :  { %p452_p1 = pnand %p450_p0, %p447_p13 }
  0xed   :  { %455 = shalt.err (!%p452_p1)
}
  0xee   :  { %396 = dma.vmem_to_hbm [thread:$0]  %s391_s26, 2048, %s731_s1, [#allocation4], %s461_s16, %s461_s16, %s462_s17  }
  0xef   :  { %458 = dma.done.wait [#allocation4], 2048  }
  0xf0   :  { %459 = vsyncadd [#allocation4], 4294965248 }
  0xf1   :  { %400 = vsyncpa [#allocation3], 1 }
  0xf2   :  { %401 = vsyncpa [#allocation4], 1 }

</bundles_post_ra>
